<compile_context>
chip_gen: v5e
topology: v5e:2x2
jax: 0.10.0
libtpu: 0.0.40
codegen_flags: <defaults>
</compile_context>

<pallas_src>
import jax
import jax.numpy as jnp
from jax import lax
from jax.experimental import pallas as pl
from jax.experimental.pallas import tpu as pltpu

EPS = 1e-5


def _round_up(x, m):
    return ((x + m - 1) // m) * m


def _one_hot_f32(be, g_pad):
    # be: [T, 1] int32 graph id per edge; -1 (padding) -> all-zero row.
    t = be.shape[0]
    gids = lax.broadcasted_iota(jnp.int32, (t, g_pad), 1)
    return (gids == be).astype(jnp.float32)


def _seg_sum(oh, x):
    # Contract the edge dim: [T,G] x [T,C] -> [G,C], f32 accumulation on MXU.
    return lax.dot_general(oh, x, (((0,), (0,)), ((), ())),
                           preferred_element_type=jnp.float32)


# ---- pass 1: linear1 + per-graph sum/sumsq of h1 --------------------------------

def _layer1_kernel(be_ref, f12_ref, w1_ref, b1_ref, h1_ref, stats_ref):
    @pl.when(pl.program_id(0) == 0)
    def _():
        stats_ref[...] = jnp.zeros_like(stats_ref)

    h = jnp.dot(f12_ref[...], w1_ref[...],
                preferred_element_type=jnp.float32) + b1_ref[...]        # [T, 4H] f32
    h1_ref[...] = h
    oh = _one_hot_f32(be_ref[...], stats_ref.shape[0])                   # [T, G]
    stats_ref[...] += _seg_sum(oh, jnp.concatenate([h, h * h], axis=-1))  # [G, 8H]


# ---- pass 2: norm1 + ReLU + linear2 + per-graph sum/sumsq of h2 ------------------

def _layer2_kernel(be_ref, h1_ref, ss1_ref, w2_ref, b2_ref, h2_ref, stats_ref):
    @pl.when(pl.program_id(0) == 0)
    def _():
        stats_ref[...] = jnp.zeros_like(stats_ref)

    h1 = h1_ref[...]                                                     # [T, 4H] f32
    c = h1.shape[-1]
    oh = _one_hot_f32(be_ref[...], ss1_ref.shape[0])                     # [T, G]
    ssb = jnp.dot(oh, ss1_ref[...],
                  preferred_element_type=jnp.float32)                    # [T, 2*4H]
    y = jnp.maximum(h1 * ssb[:, :c] + ssb[:, c:], 0.0)                   # norm + ReLU
    h2 = jnp.dot(y.astype(jnp.bfloat16), w2_ref[...],
                 preferred_element_type=jnp.float32) + b2_ref[...]       # [T, H] f32
    h2_ref[...] = h2
    stats_ref[...] += _seg_sum(oh, jnp.concatenate([h2, h2 * h2], axis=-1))


# ---- pass 3: norm2 + ReLU + final H->1 linear, lane-dense [1, T] output ----------

def _layer3_kernel(be_ref, h2_ref, ss2_ref, w3_ref, b3_ref, out_ref):
    h2 = h2_ref[...]                                                     # [T, H] f32
    c = h2.shape[-1]
    oh = _one_hot_f32(be_ref[...], ss2_ref.shape[0])
    ssb = jnp.dot(oh, ss2_ref[...],
                  preferred_element_type=jnp.float32)                    # [T, 2H]
    y = jnp.maximum(h2 * ssb[:, :c] + ssb[:, c:], 0.0)
    # Emit transposed ([1,H] x [T,H] contracted over H) so the store is lane-dense.
    out = lax.dot_general(w3_ref[...], y, (((1,), (1,)), ((), ())),
                          preferred_element_type=jnp.float32) + b3_ref[...]
    out_ref[...] = out                                                   # [1, T]


def _stats_to_scale_shift(stats, inv_n):
    # stats = [sum | sumsq] per graph; return [scale | shift] (tiny, plain JAX).
    c = stats.shape[-1] // 2
    mean = stats[:, :c] * inv_n
    var = jnp.maximum(stats[:, c:] * inv_n - mean * mean, 0.0)           # clamp >= 0
    inv_std = lax.rsqrt(var + EPS)
    return jnp.concatenate([inv_std, -mean * inv_std], axis=-1)          # [G, 2C]


def extractor_mlp(emb, edge_index, batch, params, num_graphs, *,
                  max_tile_e=512, vmem_limit_bytes=32 * 1024 * 1024):
    """emb: [N, H] f32, edge_index: [2, E] i32, batch: [N] i32 graph ids."""
    w1, b1, w2, b2, w3, b3 = params
    h_dim = emb.shape[-1]
    c1, c2 = 4 * h_dim, h_dim

    col, row = edge_index[0], edge_index[1]
    # glue: gather + concat node features per edge (data-dependent gather stays in JAX)
    f12 = jnp.concatenate([emb[col], emb[row]], axis=-1)                 # [E, 2H]
    batch_e = batch[col].astype(jnp.int32)                               # [E]

    e = f12.shape[0]
    tile_e = min(max_tile_e, _round_up(e, 128))
    e_pad = _round_up(e, tile_e)
    n_tiles = e_pad // tile_e
    g_pad = _round_up(max(int(num_graphs), 1), 8)
    pad = e_pad - e

    f12_p = jnp.pad(f12.astype(jnp.bfloat16), ((0, pad), (0, 0)))
    be_p = jnp.pad(batch_e[:, None], ((0, pad), (0, 0)), constant_values=-1)

    counts = jnp.zeros((g_pad,), jnp.float32).at[batch_e].add(1.0)
    inv_n = (1.0 / jnp.maximum(counts, 1.0))[:, None]                    # [G, 1]

    w1b, w2b = w1.astype(jnp.bfloat16), w2.astype(jnp.bfloat16)
    b1f, b2f = b1.astype(jnp.float32), b2.astype(jnp.float32)
    w3r = w3.reshape(1, c2).astype(jnp.float32)                          # [1, H]
    b3f = b3.reshape(1, 1).astype(jnp.float32)

    def cparams(sem):
        return pltpu.CompilerParams(dimension_semantics=(sem,),
                                    vmem_limit_bytes=vmem_limit_bytes)

    be_spec = pl.BlockSpec((tile_e, 1), lambda i: (i, 0))

    def full(shape):
        return pl.BlockSpec(tuple(shape), lambda i: (0, 0))

    # ---- pass 1: h1 = linear1(f12); accumulate per-graph sum/sumsq of h1 ----
    h1, stats1 = pl.pallas_call(
        _layer1_kernel,
        grid=(n_tiles,),
        in_specs=[be_spec,
                  pl.BlockSpec((tile_e, 2 * h_dim), lambda i: (i, 0)),
                  full(w1b.shape), full(b1f.shape)],
        out_specs=(pl.BlockSpec((tile_e, c1), lambda i: (i, 0)),
                   full((g_pad, 2 * c1))),
        out_shape=(jax.ShapeDtypeStruct((e_pad, c1), jnp.float32),
                   jax.ShapeDtypeStruct((g_pad, 2 * c1), jnp.float32)),
        compiler_params=cparams("arbitrary"),
    )(be_p, f12_p, w1b, b1f)
    ss1 = _stats_to_scale_shift(stats1, inv_n)                           # [G, 8H]

    # ---- pass 2: norm1 + ReLU + linear2; accumulate per-graph sum/sumsq of h2 ----
    h2, stats2 = pl.pallas_call(
        _layer2_kernel,
        grid=(n_tiles,),
        in_specs=[be_spec,
                  pl.BlockSpec((tile_e, c1), lambda i: (i, 0)),
                  full(ss1.shape), full(w2b.shape), full(b2f.shape)],
        out_specs=(pl.BlockSpec((tile_e, c2), lambda i: (i, 0)),
                   full((g_pad, 2 * c2))),
        out_shape=(jax.ShapeDtypeStruct((e_pad, c2), jnp.float32),
                   jax.ShapeDtypeStruct((g_pad, 2 * c2), jnp.float32)),
        compiler_params=cparams("arbitrary"),
    )(be_p, h1, ss1, w2b, b2f)
    ss2 = _stats_to_scale_shift(stats2, inv_n)                           # [G, 2H]

    # ---- pass 3: norm2 + ReLU + final linear; lane-dense [1, E_pad] output ----
    out_t = pl.pallas_call(
        _layer3_kernel,
        grid=(n_tiles,),
        in_specs=[be_spec,
                  pl.BlockSpec((tile_e, c2), lambda i: (i, 0)),
                  full(ss2.shape), full(w3r.shape), full(b3f.shape)],
        out_specs=pl.BlockSpec((1, tile_e), lambda i: (0, i)),
        out_shape=jax.ShapeDtypeStruct((1, e_pad), jnp.float32),
        compiler_params=cparams("parallel"),
    )(be_p, h2, ss2, w3r, b3f)

    return out_t[0, :e][:, None]                                         # [E, 1]


def init_params(key, hidden_dim):
    """Deterministic synthetic weights. Linear i: x @ W[i] + b[i] (W is [in,out])."""
    h = hidden_dim
    dims = [2 * h, 4 * h, h, 1]                                          # learn_edge_att=True
    ks = jax.random.split(key, 2 * (len(dims) - 1))
    params = []
    for i in range(1, len(dims)):
        fan_in, fan_out = dims[i - 1], dims[i]
        w = jax.random.normal(ks[2 * (i - 1)], (fan_in, fan_out),
                              jnp.float32) * (1.0 / jnp.sqrt(fan_in))
        b = jax.random.normal(ks[2 * (i - 1) + 1], (1, fan_out),
                              jnp.float32) * 0.01
        params += [w, b]
    return tuple(params)


if __name__ == "__main__":
    key = jax.random.PRNGKey(0)
    H = 32          # shared_config.hidden_dim
    N = 16          # nodes
    E = 64          # edges
    G = 2           # graphs in the batch

    k_emb, k_col, k_row, k_bat, k_par = jax.random.split(key, 5)
    emb = jax.random.normal(k_emb, (N, H), jnp.float32)
    col = jax.random.randint(k_col, (E,), 0, N, dtype=jnp.int32)
    row = jax.random.randint(k_row, (E,), 0, N, dtype=jnp.int32)
    edge_index = jnp.stack([col, row])                                   # [2, E]
    batch = jnp.sort(jax.random.randint(k_bat, (N,), 0, G, dtype=jnp.int32))

    params = init_params(k_par, H)

    att_log_logits = extractor_mlp(emb, edge_index, batch, params, num_graphs=G)
    jax.block_until_ready(att_log_logits)
    assert att_log_logits.shape == (E, 1)
    assert bool(jnp.all(jnp.isfinite(att_log_logits)))
    # Dropout layers are identity at inference; training-mode dropout omitted.
    print("KERNEL_OK")
</pallas_src>

<mosaic_0001>
module attributes {stable_mosaic.version = 11 : i64} {
  func.func @_layer1_kernel(%arg0: i32, %arg1: memref<128x1xi32, #tpu.memory_space<vmem>>, %arg2: memref<128x64xbf16, #tpu.memory_space<vmem>>, %arg3: memref<64x128xbf16, #tpu.memory_space<vmem>>, %arg4: memref<1x128xf32, #tpu.memory_space<vmem>>, %arg5: memref<128x128xf32, #tpu.memory_space<vmem>>, %arg6: memref<8x256xf32, #tpu.memory_space<vmem>>) attributes {dimension_semantics = [#tpu.dimension_semantics<arbitrary>], iteration_bounds = array<i64: 1>, scalar_prefetch = 0 : i64, scratch_operands = 0 : i64, tpu.core_type = #tpu.core_type<tc>, window_params = [{transform_indices = @transform_0, window_bounds = array<i64: 128, 1>}, {transform_indices = @transform_1, window_bounds = array<i64: 128, 64>}, {pipeline_mode = #tpu.pipeline_mode<synchronous>, transform_indices = @transform_2, window_bounds = array<i64: 64, 128>}, {pipeline_mode = #tpu.pipeline_mode<synchronous>, transform_indices = @transform_3, window_bounds = array<i64: 1, 128>}, {transform_indices = @transform_4, window_bounds = array<i64: 128, 128>}, {pipeline_mode = #tpu.pipeline_mode<synchronous>, transform_indices = @transform_5, window_bounds = array<i64: 8, 256>}]} {
    %c0_i32 = arith.constant 0 : i32
    %0 = arith.cmpi eq, %arg0, %c0_i32 : i32
    %1 = arith.extui %0 : i1 to i32
    %c0_i32_0 = arith.constant 0 : i32
    %2 = arith.cmpi ne, %1, %c0_i32_0 : i32
    scf.if %2 {
      %cst_15 = arith.constant 0.000000e+00 : f32
      %22 = vector.broadcast %cst_15 : f32 to vector<8x256xf32>
      %c0_16 = arith.constant 0 : index
      %c0_17 = arith.constant 0 : index
      %23 = vector.load %arg6[%c0_16, %c0_17] : memref<8x256xf32, #tpu.memory_space<vmem>>, vector<8x256xf32>
      tpu.vector_store %arg6[%c0_16, %c0_17], %22 {strides = array<i32>} : memref<8x256xf32, #tpu.memory_space<vmem>>, vector<8x256xf32>,
    } else {
    }
    %c0 = arith.constant 0 : index
    %c0_1 = arith.constant 0 : index
    %3 = vector.load %arg2[%c0, %c0_1] : memref<128x64xbf16, #tpu.memory_space<vmem>>, vector<128x64xbf16>
    %c0_2 = arith.constant 0 : index
    %c0_3 = arith.constant 0 : index
    %4 = vector.load %arg3[%c0_2, %c0_3] : memref<64x128xbf16, #tpu.memory_space<vmem>>, vector<64x128xbf16>
    %cst = arith.constant dense<0.000000e+00> : vector<128x128xf32>
    %5 = tpu.matmul %3, %4, %cst {dimension_numbers = #tpu.dot_dimension_numbers<[1], [0], [0], [1], [0, 0, 1, 1], [], []>} : vector<128x64xbf16>, vector<64x128xbf16>, vector<128x128xf32> -> vector<128x128xf32>
    %c0_4 = arith.constant 0 : index
    %c0_5 = arith.constant 0 : index
    %6 = vector.load %arg4[%c0_4, %c0_5] : memref<1x128xf32, #tpu.memory_space<vmem>>, vector<1x128xf32>
    %7 = vector.broadcast %6 : vector<1x128xf32> to vector<128x128xf32>
    %8 = arith.addf %5, %7 : vector<128x128xf32>
    %c0_6 = arith.constant 0 : index
    %c0_7 = arith.constant 0 : index
    %9 = vector.load %arg5[%c0_6, %c0_7] : memref<128x128xf32, #tpu.memory_space<vmem>>, vector<128x128xf32>
    tpu.vector_store %arg5[%c0_6, %c0_7], %8 {strides = array<i32>} : memref<128x128xf32, #tpu.memory_space<vmem>>, vector<128x128xf32>,
    %c0_8 = arith.constant 0 : index
    %c0_9 = arith.constant 0 : index
    %10 = vector.load %arg1[%c0_8, %c0_9] : memref<128x1xi32, #tpu.memory_space<vmem>>, vector<128x1xi32>
    %11 = tpu.iota {dimensions = array<i32: 1>} : vector<128x8xi32>
    %12 = vector.broadcast %10 : vector<128x1xi32> to vector<128x8xi32>
    %13 = arith.cmpi eq, %11, %12 : vector<128x8xi32>
    %14 = arith.extui %13 : vector<128x8xi1> to vector<128x8xi32>
    %15 = arith.sitofp %14 : vector<128x8xi32> to vector<128x8xf32>
    %c0_10 = arith.constant 0 : index
    %c0_11 = arith.constant 0 : index
    %16 = vector.load %arg6[%c0_10, %c0_11] : memref<8x256xf32, #tpu.memory_space<vmem>>, vector<8x256xf32>
    %17 = arith.mulf %8, %8 : vector<128x128xf32>
    %18 = tpu.concatenate %8, %17 in 1 : vector<128x128xf32>, vector<128x128xf32> -> vector<128x256xf32>
    %cst_12 = arith.constant dense<0.000000e+00> : vector<8x256xf32>
    %19 = tpu.matmul %15, %18, %cst_12 {dimension_numbers = #tpu.dot_dimension_numbers<[0], [0], [1], [1], [0, 1, 1, 1], [], []>} : vector<128x8xf32>, vector<128x256xf32>, vector<8x256xf32> -> vector<8x256xf32>
    %20 = arith.addf %16, %19 : vector<8x256xf32>
    %c0_13 = arith.constant 0 : index
    %c0_14 = arith.constant 0 : index
    %21 = vector.load %arg6[%c0_13, %c0_14] : memref<8x256xf32, #tpu.memory_space<vmem>>, vector<8x256xf32>
    tpu.vector_store %arg6[%c0_13, %c0_14], %20 {strides = array<i32>} : memref<8x256xf32, #tpu.memory_space<vmem>>, vector<8x256xf32>,
    return
  }
  func.func @transform_0(%arg0: i32) -> (i32, i32) {
    %c0_i32 = arith.constant 0 : i32
    %c0_i32_0 = arith.constant 0 : i32
    return %arg0, %c0_i32 : i32, i32
  }
  func.func @transform_1(%arg0: i32) -> (i32, i32) {
    %c0_i32 = arith.constant 0 : i32
    %c0_i32_0 = arith.constant 0 : i32
    return %arg0, %c0_i32 : i32, i32
  }
  func.func @transform_2(%arg0: i32) -> (i32, i32) {
    %c0_i32 = arith.constant 0 : i32
    %c0_i32_0 = arith.constant 0 : i32
    %c0_i32_1 = arith.constant 0 : i32
    return %c0_i32, %c0_i32_0 : i32, i32
  }
  func.func @transform_3(%arg0: i32) -> (i32, i32) {
    %c0_i32 = arith.constant 0 : i32
    %c0_i32_0 = arith.constant 0 : i32
    %c0_i32_1 = arith.constant 0 : i32
    return %c0_i32, %c0_i32_0 : i32, i32
  }
  func.func @transform_4(%arg0: i32) -> (i32, i32) {
    %c0_i32 = arith.constant 0 : i32
    %c0_i32_0 = arith.constant 0 : i32
    return %arg0, %c0_i32 : i32, i32
  }
  func.func @transform_5(%arg0: i32) -> (i32, i32) {
    %c0_i32 = arith.constant 0 : i32
    %c0_i32_0 = arith.constant 0 : i32
    %c0_i32_1 = arith.constant 0 : i32
    return %c0_i32, %c0_i32_0 : i32, i32
  }
}

</mosaic_0001>

<bundles_post_ra>
// kernel: tpu_custom_call.1
= control target key start
LH: loop header
LB: loop body
LE: loop exit
PB: predicated region body
PF: predicated region fallthrough
CT: control target
= control target key end

     0   :  { %11 = vsyncpa [#allocation3], 0  ;;  %v613_v2 = vmov 0   ;;  %s838_s0 = inlined_call_operand.vmem [shape: s32[128,1], index: 0, kind: input, shape index: {}]   ;;  %s839_s1 = inlined_call_operand.vmem [shape: bf16[128,64], index: 1, kind: input, shape index: {}]   ;;  %s840_s2 = inlined_call_operand.vmem [shape: bf16[64,128], index: 2, kind: input, shape index: {}]   ;;  %s841_s3 = inlined_call_operand.vmem [shape: f32[1,128], index: 3, kind: input, shape index: {}]   ;;  %s842_s4 = inlined_call_operand.hbm [shape: f32[128,128], index: 4, kind: output, shape index: {0}]   ;;  %s843_s5 = inlined_call_operand.hbm [shape: f32[8,256], index: 5, kind: output, shape index: {1}]  }
   0x1   :  { %v212_v0 = vld [vmem:[%s838_s0 + $0x10] sm:$0xff]  ;;  %v210_v1 = vld [vmem:[%s838_s0] sm:$0xff]  ;;  %558 = vset.pattern.permute.xlu1 %v613_v2  ;;  %557 = vset.pattern.permute.xlu0 %v613_v2  ;;  %v535_v3 = vld [vmem:[%s840_s2 + $0x18] sm:$0xff] }
   0x2   :  { %235 = vperm.xlu1 %558, %v212_v0   ;;  %229 = vperm.xlu0 %557, %v210_v1   ;;  %v534_v4 = vld [vmem:[%s840_s2 + $0x10] sm:$0xff]  ;;  %v214_v5 = vld [vmem:[%s838_s0 + $0x20] sm:$0xff] }
   0x3   :  { %538 = vmatpush.bf16.msra.mxu3 %v535_v3  ;;  %559 = vset.pattern.permute.xlu2 %v613_v2 }
   0x4   :  { %241 = vperm.xlu2 %559, %v214_v5   ;;  %537 = vmatpush.bf16.msra.mxu2 %v535_v3 }
   0x5   :  { %536 = vmatpush.bf16.msra.mxu1 %v535_v3  ;;  %149 = vmatpush.bf16.msra.mxu0 %v535_v3 }
   0x6   :  { %12 = vsyncpa [#allocation5], 0  ;;  %v213_v6 = vld [vmem:[%s838_s0 + $0x18] sm:$0xff]  ;;  %v211_v7 = vld [vmem:[%s838_s0 + $0x8] sm:$0xff]  ;;  %vm120_vm0 = vcmask 523264   ;;  %v226_v29 = vlaneseq  ;;  %v614_v32 = vmov 0.0  }
   0x7   :  { %541 = vmatpush.bf16.msra.mxu3 %v534_v4  ;;  %v533_v8 = vld [vmem:[%s840_s2 + $0x8] sm:$0xff]  ;;  %v532_v10 = vld [vmem:[%s840_s2] sm:$0xff]  ;;  %v217_v11 = vld [vmem:[%s838_s0 + $0x38] sm:$0xff]  ;;  %s424_s25 = sshll.u32 %s842_s4, 4  ;;  %s616_s26 = smov 128   ;;  %s425_s25 = int_to_ptr.hbm [resolvable:$true] %s424_s25 }
   0x8   :  { %540 = vmatpush.bf16.msra.mxu2 %v534_v4  ;;  %v215_v9 = vld [vmem:[%s838_s0 + $0x28] sm:$0xff]  ;;  %v216_v12 = vld [vmem:[%s838_s0 + $0x30] sm:$0xff]  ;;  %v218_v14 = vld [vmem:[%s838_s0 + $0x40] sm:$0xff]  ;;  %v741_v30 = vand.u32 127, %v226_v29  ;;  %s617_s27 = smov 8   ;;  %s618_s28 = smov [#allocation4]  }
   0x9   :  { %539 = vmatpush.bf16.msra.mxu1 %v534_v4  ;;  %150 = vmatpush.bf16.msra.mxu0 %v534_v4  ;;  %v529_v13 = vld [vmem:[%s839_s1 + $0x28] sm:$0xff]  ;;  %v527_v15 = vld [vmem:[%s839_s1 + $0x18] sm:$0xff]  ;;  %v220_v17 = vld [vmem:[%s838_s0 + $0x50] sm:$0xff]  ;;  %s436_s29 = sshll.u32 %s618_s28, 4  ;;  %s438_s7 = sshll.u32 %s843_s5, 4  ;;  %s437_s29 = int_to_ptr.vmem [resolvable:$true] %s436_s29  ;;  %s439_s7 = int_to_ptr.hbm [resolvable:$true] %s438_s7 }
   0xa   :  { %238 = vperm.xlu1 %558, %v213_v6   ;;  %232 = vperm.xlu0 %557, %v211_v7   ;;  %v525_v16 = vld [vmem:[%s839_s1 + $0x8] sm:$0xff]  ;;  %v221_v19 = vld [vmem:[%s838_s0 + $0x58] sm:$0xff]  ;;  %v222_v21 = vld [vmem:[%s838_s0 + $0x60] sm:$0xff] }
   0xb   :  { %544 = vmatpush.bf16.msra.mxu3 %v533_v8  ;;  %v219_v18 = vld [vmem:[%s838_s0 + $0x48] sm:$0xff]  ;;  %v530_v22 = vld [vmem:[%s839_s1 + $0x30] sm:$0xff]  ;;  %v528_v24 = vld [vmem:[%s839_s1 + $0x20] sm:$0xff] }
   0xc   :  { %244 = vperm.xlu2 %559, %v215_v9   ;;  %543 = vmatpush.bf16.msra.mxu2 %v533_v8  ;;  %v223_v20 = vld [vmem:[%s838_s0 + $0x68] sm:$0xff]  ;;  %v224_v23 = vld [vmem:[%s838_s0 + $0x70] sm:$0xff]  ;;  %v225_v26 = vld [vmem:[%s838_s0 + $0x78] sm:$0xff] }
   0xd   :  { %542 = vmatpush.bf16.msra.mxu1 %v533_v8  ;;  %151 = vmatpush.bf16.msra.mxu0 %v533_v8  ;;  %v526_v25 = vld [vmem:[%s839_s1 + $0x10] sm:$0xff]  ;;  %v531_v27 = vld [vmem:[%s839_s1 + $0x38] sm:$0xff]  ;;  %v524_v28 = vld [vmem:[%s839_s1] sm:$0xff] }
   0xe   :  { %v756_v42 = vld [vmem:[%s841_s3] ss:$0 sm:$0xff]  ;;  %s615_s3 = smov [#allocation2]  }
   0xf   :  { %547 = vmatpush.bf16.msra.mxu3 %v532_v10  ;;  %s422_s22 = sshll.u32 %s615_s3, 4  ;;  %s423_s22 = int_to_ptr.vmem [resolvable:$true] %s422_s22 }
  0x10   :  { %546 = vmatpush.bf16.msra.mxu2 %v532_v10 }
  0x11   :  { %545 = vmatpush.bf16.msra.mxu1 %v532_v10  ;;  %152 = vmatpush.bf16.msra.mxu0 %v532_v10 }
  0x12   :  { %250 = vperm.xlu1 %558, %v217_v11   ;;  %247 = vperm.xlu0 %557, %v216_v12  }
  0x13   :  { %505 = vmatmul.msk.bf16.vlgmr.msra.gmra.mxu3 %vm120_vm0, %v529_v13  ;;  %503 = vmatmul.msk.bf16.vlgmr.msra.gmra.mxu2 %vm120_vm0, %v527_v15 }
  0x14   :  { %253 = vperm.xlu2 %559, %v218_v14   ;;  %501 = vmatmul.msk.bf16.vlgmr.msra.gmra.mxu1 %vm120_vm0, %v525_v16 }
  0x15   :  { %500 = vmatmul.msk.bf16.vlgmr.msra.gmra.mxu0 %vm120_vm0, %v524_v28 }
  0x1a   :  { %259 = vperm.xlu1 %558, %v220_v17   ;;  %256 = vperm.xlu0 %557, %v219_v18  }
  0x1c   :  { %262 = vperm.xlu2 %559, %v221_v19  }
  0x22   :  { %268 = vperm.xlu1 %558, %v223_v20   ;;  %265 = vperm.xlu0 %557, %v222_v21  }
  0x23   :  { %506 = vmatmul.msk.bf16.gmra.mxu3 %vm120_vm0, %v530_v22  ;;  %504 = vmatmul.msk.bf16.gmra.mxu2 %vm120_vm0, %v528_v24 }
  0x24   :  { %271 = vperm.xlu2 %559, %v224_v23   ;;  %502 = vmatmul.msk.bf16.gmra.mxu1 %vm120_vm0, %v526_v25 }
  0x2a   :  { %274 = vperm.xlu0 %557, %v225_v26  }
  0x33   :  { %507 = vmatmul.msk.bf16.gmra.mxu3 %vm120_vm0, %v531_v27 }
  0x5e   :  { %v242_v40 = vpop.permute.xlu2 %241 }
  0x5f   :  { %vm280_vm5 = vcmp.eq.s32.totalorder %v741_v30, %v242_v40 }
  0x60   :  { %v512_v41 = vsel %vm280_vm5, 1.0, %v614_v32 }
  0x66   :  { %v245_v45 = vpop.permute.xlu2 %244 }
  0x67   :  { %vm281_vm6 = vcmp.eq.s32.totalorder %v741_v30, %v245_v45 }
  0x68   :  { %v513_v46 = vsel %vm281_vm6, 1.0, %v614_v32 }
  0x6e   :  { %v254_v63 = vpop.permute.xlu2 %253 }
  0x6f   :  { %vm284_vm9 = vcmp.eq.s32.totalorder %v741_v30, %v254_v63 }
  0x70   :  { %v516_v0 = vsel %vm284_vm9, 1.0, %v614_v32 }
  0x74   :  { %v230_v31 = vpop.permute.xlu0 %229  ;;  %v236_v36 = vpop.permute.xlu1 %235 }
  0x75   :  { %vm276_vm1 = vcmp.eq.s32.totalorder %v741_v30, %v230_v31  ;;  %vm278_vm3 = vcmp.eq.s32.totalorder %v741_v30, %v236_v36 }
  0x76   :  { %v508_v33 = vsel %vm276_vm1, 1.0, %v614_v32  ;;  %v510_v37 = vsel %vm278_vm3, 1.0, %v614_v32  ;;  %v263_v24 = vpop.permute.xlu2 %262 }
  0x77   :  { %342 = vxpose.xlu1.b32.start [1/16] (narrow) %v508_v33, 8  ;;  %vm287_vm12 = vcmp.eq.s32.totalorder %v741_v30, %v263_v24 }
  0x78   :  { %v519_v27 = vsel %vm287_vm12, 1.0, %v614_v32 }
  0x7c   :  { %v233_v34 = vpop.permute.xlu0 %232  ;;  %v239_v38 = vpop.permute.xlu1 %238 }
  0x7d   :  { %vm277_vm2 = vcmp.eq.s32.totalorder %v741_v30, %v233_v34  ;;  %vm279_vm4 = vcmp.eq.s32.totalorder %v741_v30, %v239_v38 }
  0x7e   :  { %v509_v35 = vsel %vm277_vm2, 1.0, %v614_v32  ;;  %v511_v39 = vsel %vm279_vm4, 1.0, %v614_v32 }
  0x7f   :  { %343 = vxpose.xlu1.b32.cont [2/16] (narrow) %v509_v35, 8 }
  0x84   :  { %v248_v49 = vpop.permute.xlu0 %247  ;;  %v251_v54 = vpop.permute.xlu1 %250 }
  0x85   :  { %vm282_vm7 = vcmp.eq.s32.totalorder %v741_v30, %v248_v49  ;;  %vm283_vm8 = vcmp.eq.s32.totalorder %v741_v30, %v251_v54 }
  0x86   :  { %v514_v50 = vsel %vm282_vm7, 1.0, %v614_v32  ;;  %v515_v56 = vsel %vm283_vm8, 1.0, %v614_v32 }
  0x87   :  { %344 = vxpose.xlu1.b32.cont [3/16] (narrow) %v510_v37, 8 }
  0x8c   :  { %v257_v5 = vpop.permute.xlu0 %256  ;;  %v260_v13 = vpop.permute.xlu1 %259 }
  0x8d   :  { %vm285_vm10 = vcmp.eq.s32.totalorder %v741_v30, %v257_v5  ;;  %vm286_vm11 = vcmp.eq.s32.totalorder %v741_v30, %v260_v13 }
  0x8e   :  { %v517_v8 = vsel %vm285_vm10, 1.0, %v614_v32  ;;  %v518_v19 = vsel %vm286_vm11, 1.0, %v614_v32 }
  0x8f   :  { %345 = vxpose.xlu1.b32.cont [4/16] (narrow) %v511_v39, 8 }
  0x91   :  { %v159_v59 = vpop.f32.mrf.mxu1 }
  0x92   :  { %v779_v61 = vadd.f32 %v756_v42, %v159_v59 }
  0x94   :  { %196 = vst [vmem:[#allocation2 + $0x10] sm:$0xff] %v779_v61  ;;  %v266_v29 = vpop.permute.xlu0 %265  ;;  %v269_v37 = vpop.permute.xlu1 %268  ;;  %v328_v39 = vmul.f32 %v779_v61, %v779_v61 }
  0x95   :  { %vm288_vm13 = vcmp.eq.s32.totalorder %v741_v30, %v266_v29  ;;  %vm289_vm14 = vcmp.eq.s32.totalorder %v741_v30, %v269_v37 }
  0x96   :  { %v179_v43 = vpop.f32.mrf.mxu3  ;;  %v169_v53 = vpop.f32.mrf.mxu2  ;;  %v520_v35 = vsel %vm288_vm13, 1.0, %v614_v32  ;;  %v521_v40 = vsel %vm289_vm14, 1.0, %v614_v32 }
  0x97   :  { %346 = vxpose.xlu1.b32.cont [5/16] (narrow) %v512_v41, 8  ;;  %v759_v44 = vadd.f32 %v756_v42, %v179_v43  ;;  %v772_v55 = vadd.f32 %v756_v42, %v169_v53  ;;  %v272_v41 = vpop.permute.xlu2 %271  ;;  %v154_v43 = vpop.f32.mrf.mxu0 }
  0x98   :  { %vm290_vm15 = vcmp.eq.s32.totalorder %v741_v30, %v272_v41 }
  0x99   :  { %204 = vst [vmem:[#allocation2 + $0x50] sm:$0xff] %v759_v44  ;;  %v161_v3 = vpop.f32.mrf.mxu1  ;;  %v336_v25 = vmul.f32 %v759_v44, %v759_v44  ;;  %v332_v33 = vmul.f32 %v772_v55, %v772_v55  ;;  %v522_v45 = vsel %vm290_vm15, 1.0, %v614_v32 }
  0x9a   :  { %200 = vst [vmem:[#allocation2 + $0x30] sm:$0xff] %v772_v55  ;;  %v790_v6 = vadd.f32 %v756_v42, %v161_v3 }
  0x9c   :  { %197 = vst [vmem:[#allocation2 + $0x18] sm:$0xff] %v790_v6  ;;  %v329_v38 = vmul.f32 %v790_v6, %v790_v6 }
  0x9e   :  { %v181_v47 = vpop.f32.mrf.mxu3  ;;  %v171_v60 = vpop.f32.mrf.mxu2 }
  0x9f   :  { %347 = vxpose.xlu1.b32.cont [6/16] (narrow) %v513_v46, 8  ;;  %v765_v48 = vadd.f32 %v756_v42, %v181_v47  ;;  %v782_v62 = vadd.f32 %v756_v42, %v171_v60  ;;  %v275_v46 = vpop.permute.xlu0 %274  ;;  %v156_v47 = vpop.f32.mrf.mxu0 }
  0xa0   :  { %vm291_vm0 = vcmp.eq.s32.totalorder %v741_v30, %v275_v46 }
  0xa1   :  { %205 = vst [vmem:[#allocation2 + $0x58] sm:$0xff] %v765_v48  ;;  %v164_v11 = vpop.f32.mrf.mxu1  ;;  %v337_v22 = vmul.f32 %v765_v48, %v765_v48  ;;  %v333_v31 = vmul.f32 %v782_v62, %v782_v62 }
  0xa2   :  { %201 = vst [vmem:[#allocation2 + $0x38] sm:$0xff] %v782_v62  ;;  %v165_v14 = vadd.f32 %v756_v42, %v164_v11 }
  0xa4   :  { %198 = vst [vmem:[#allocation2 + $0x20] sm:$0xff] %v165_v14  ;;  %v330_v36 = vmul.f32 %v165_v14, %v165_v14 }
  0xa6   :  { %v184_v51 = vpop.f32.mrf.mxu3  ;;  %v174_v4 = vpop.f32.mrf.mxu2 }
  0xa7   :  { %348 = vxpose.xlu1.b32.cont [7/16] (narrow) %v514_v50, 8  ;;  %v185_v52 = vadd.f32 %v756_v42, %v184_v51  ;;  %v175_v7 = vadd.f32 %v756_v42, %v174_v4  ;;  %v523_v50 = vsel %vm291_vm0, 1.0, %v614_v32 }
  0xa9   :  { %206 = vst [vmem:[#allocation2 + $0x60] sm:$0xff] %v185_v52  ;;  %v338_v20 = vmul.f32 %v185_v52, %v185_v52  ;;  %v166_v21 = vpop.f32.mrf.mxu1  ;;  %v334_v28 = vmul.f32 %v175_v7, %v175_v7 }
  0xaa   :  { %202 = vst [vmem:[#allocation2 + $0x40] sm:$0xff] %v175_v7  ;;  %v167_v23 = vadd.f32 %v756_v42, %v166_v21 }
  0xac   :  { %199 = vst [vmem:[#allocation2 + $0x28] sm:$0xff] %v167_v23  ;;  %v331_v34 = vmul.f32 %v167_v23, %v167_v23 }
  0xae   :  { %v186_v57 = vpop.f32.mrf.mxu3  ;;  %v176_v12 = vpop.f32.mrf.mxu2 }
  0xaf   :  { %349 = vxpose.xlu1.b32.cont [8/16] (narrow) %v515_v56, 8  ;;  %v187_v58 = vadd.f32 %v756_v42, %v186_v57  ;;  %v177_v17 = vadd.f32 %v756_v42, %v176_v12 }
  0xb1   :  { %207 = vst [vmem:[#allocation2 + $0x68] sm:$0xff] %v187_v58  ;;  %v339_v18 = vmul.f32 %v187_v58, %v187_v58  ;;  %v335_v26 = vmul.f32 %v177_v17, %v177_v17 }
  0xb2   :  { %203 = vst [vmem:[#allocation2 + $0x48] sm:$0xff] %v177_v17 }
  0xb6   :  { %v189_v1 = vpop.f32.mrf.mxu3 }
  0xb7   :  { %350 = vxpose.xlu1.b32.cont [9/16] (narrow) %v516_v0, 8  ;;  %v190_v2 = vadd.f32 %v756_v42, %v189_v1 }
  0xb9   :  { %208 = vst [vmem:[#allocation2 + $0x70] sm:$0xff] %v190_v2  ;;  %v340_v16 = vmul.f32 %v190_v2, %v190_v2 }
  0xbe   :  { %v191_v9 = vpop.f32.mrf.mxu3 }
  0xbf   :  { %351 = vxpose.xlu1.b32.cont [10/16] (narrow) %v517_v8, 8  ;;  %v192_v10 = vadd.f32 %v756_v42, %v191_v9 }
  0xc1   :  { %209 = vst [vmem:[#allocation2 + $0x78] sm:$0xff] %v192_v10  ;;  %374 = vmatpush.msrb.mxu1 %v192_v10  ;;  %v341_v15 = vmul.f32 %v192_v10, %v192_v10 }
  0xc3   :  { %375 = vmatpush.msrb.mxu1 %v190_v2  ;;  %394 = vmatpush.msrb.mxu2 %v341_v15 }
  0xc5   :  { %376 = vmatpush.msrb.mxu1 %v187_v58  ;;  %395 = vmatpush.msrb.mxu2 %v340_v16 }
  0xc7   :  { %352 = vxpose.xlu1.b32.cont [11/16] (narrow) %v518_v19, 8  ;;  %377 = vmatpush.msrb.mxu1 %v185_v52 }
  0xc8   :  { %396 = vmatpush.msrb.mxu2 %v339_v18 }
  0xc9   :  { %378 = vmatpush.msrb.mxu1 %v765_v48  ;;  %v157_v48 = vadd.f32 %v756_v42, %v156_v47 }
  0xca   :  { %397 = vmatpush.msrb.mxu2 %v338_v20 }
  0xcb   :  { %379 = vmatpush.msrb.mxu1 %v759_v44  ;;  %v155_v44 = vadd.f32 %v756_v42, %v154_v43  ;;  %195 = vst [vmem:[#allocation2 + $0x8] sm:$0xff] %v157_v48  ;;  %v327_v49 = vmul.f32 %v157_v48, %v157_v48 }
  0xcc   :  { %398 = vmatpush.msrb.mxu2 %v337_v22 }
  0xcd   :  { %380 = vmatpush.msrb.mxu1 %v177_v17  ;;  %194 = vst [vmem:[#allocation2] sm:$0xff] %v155_v44  ;;  %v326_v51 = vmul.f32 %v155_v44, %v155_v44 }
  0xce   :  { %399 = vmatpush.msrb.mxu2 %v336_v25  ;;  %430 = dma.vmem_to_hbm [thread:$0]  %s423_s22, 2048, %s425_s25, [#allocation3], %s616_s26, %s616_s26, %s617_s27  }
  0xcf   :  { %353 = vxpose.xlu1.b32.cont [12/16] (narrow) %v519_v27, 8  ;;  %381 = vmatpush.msrb.mxu1 %v175_v7 }
  0xd0   :  { %400 = vmatpush.msrb.mxu2 %v335_v26 }
  0xd1   :  { %382 = vmatpush.msrb.mxu1 %v782_v62 }
  0xd2   :  { %401 = vmatpush.msrb.mxu2 %v334_v28 }
  0xd3   :  { %383 = vmatpush.msrb.mxu1 %v772_v55 }
  0xd4   :  { %402 = vmatpush.msrb.mxu2 %v333_v31 }
  0xd5   :  { %384 = vmatpush.msrb.mxu1 %v167_v23 }
  0xd6   :  { %403 = vmatpush.msrb.mxu2 %v332_v33 }
  0xd7   :  { %354 = vxpose.xlu1.b32.cont [13/16] (narrow) %v520_v35, 8  ;;  %385 = vmatpush.msrb.mxu1 %v165_v14 }
  0xd8   :  { %404 = vmatpush.msrb.mxu2 %v331_v34 }
  0xd9   :  { %386 = vmatpush.msrb.mxu1 %v790_v6 }
  0xda   :  { %405 = vmatpush.msrb.mxu2 %v330_v36 }
  0xdb   :  { %387 = vmatpush.msrb.mxu1 %v779_v61 }
  0xdc   :  { %406 = vmatpush.msrb.mxu2 %v329_v38 }
  0xdd   :  { %388 = vmatpush.msrb.mxu1 %v157_v48 }
  0xde   :  { %407 = vmatpush.msrb.mxu2 %v328_v39 }
  0xdf   :  { %355 = vxpose.xlu1.b32.cont [14/16] (narrow) %v521_v40, 8  ;;  %389 = vmatpush.msrb.mxu1 %v155_v44 }
  0xe0   :  { %408 = vmatpush.msrb.mxu2 %v327_v49 }
  0xe2   :  { %409 = vmatpush.msrb.mxu2 %v326_v51 }
  0xe7   :  { %356 = vxpose.xlu1.b32.cont [15/16] (narrow) %v522_v45, 8 }
  0xef   :  { %357 = vxpose.xlu1.b32.end [16/16] (narrow) %v523_v50, 8 }
 0x11b   :  { %v358_v52 = vpop.trf.xlu1 }
 0x11c   :  { %390 = vmatmul.f32.vlgmr.msrb.gmra.mxu1 %v358_v52  ;;  %410 = vmatmul.f32.vlgmr.msrb.gmra.mxu2 %v358_v52 }
 0x199   :  { %v391_v30 = vpop.f32.mrf.mxu1 }
 0x19a   :  { %416 = vst [vmem:[#allocation4] sm:$0xff] %v391_v30 }
 0x19f   :  { %v411_v32 = vpop.f32.mrf.mxu2 }
 0x1a0   :  { %417 = vst [vmem:[#allocation4 + $0x8] sm:$0xff] %v411_v32 }
 0x1a1   :  { %441 = dma.vmem_to_hbm [thread:$0]  %s437_s29, 256, %s439_s7, [#allocation5]  }
 0x1a2   :  { %609 = dma.done.wait [#allocation3], 2048  }
 0x1a3   :  { %610 = vsyncadd [#allocation3], 4294965248 }
 0x1a4   :  { %611 = dma.done.wait [#allocation5], 256  }
 0x1a5   :  { %612 = vsyncadd [#allocation5], 4294967040 }
 0x1a6   :  { %450 = vsyncpa [#allocation3], 1 }
 0x1a7   :  { %451 = vsyncpa [#allocation5], 1 }

</bundles_post_ra>
